<compile_context>
chip_gen: v6e
topology: v6e:2x2x1
jax: 0.10.0
libtpu: 0.0.40
codegen_flags: <defaults>
</compile_context>

<pallas_src>
from functools import partial

import jax
import jax.numpy as jnp
from jax.experimental import pallas as pl
from jax.experimental.pallas import tpu as pltpu


def _round_up(n: int, m: int) -> int:
    return (n + m - 1) // m * m


def dqn_mlp_kernel(x_ref, w1_ref, w2_ref, w3_ref, b1_ref, b2_ref, b3_ref,
                   q_ref, act_ref, maxq_ref):
    # x:  [6, TB]   bf16      (batch on lanes)
    # w1: [128, 6]  bf16      w2: [64, 128] bf16     w3: [A, 64] bf16
    # b1: [128, 1]  f32       b2: [64, 1]   f32      b3: [A, 1]  f32
    # q:  [A, TB]   f32       act: [1, TB] i32       maxq: [1, TB] f32
    n_actions = q_ref.shape[0]

    xT = x_ref[...]

    # fc1 + ReLU  (bf16 operands on the MXU, f32 accumulation & elementwise).
    h1 = jnp.dot(w1_ref[...], xT, preferred_element_type=jnp.float32) + b1_ref[...]
    h1 = jnp.maximum(h1, 0.0)
    # dropout1: eval-mode identity.

    # fc2 + ReLU
    h2 = jnp.dot(w2_ref[...], h1.astype(w2_ref.dtype),
                 preferred_element_type=jnp.float32) + b2_ref[...]
    h2 = jnp.maximum(h2, 0.0)
    # dropout2: eval-mode identity.

    # fc3 (no activation) -> Q-values, transposed [A, TB] (lane-dense store).
    q = jnp.dot(w3_ref[...], h2.astype(w3_ref.dtype),
                preferred_element_type=jnp.float32) + b3_ref[...]
    q_ref[...] = q.astype(q_ref.dtype)

    # Fused greedy action selection: sublane reduce over the A (<=8) rows.
    max_q = jnp.max(q, axis=0, keepdims=True)                      # [1, TB]
    row = jax.lax.broadcasted_iota(jnp.int32, q.shape, 0)          # [A, TB]
    act = jnp.min(jnp.where(q == max_q, row, n_actions),
                  axis=0, keepdims=True)                           # first argmax
    act_ref[...] = act.astype(jnp.int32)
    maxq_ref[...] = max_q.astype(maxq_ref.dtype)


@partial(jax.jit, static_argnames=("block_b",))
def dqn_forward(x, params, *, block_b: int = 2048):
    """Fused DQN forward.

    x: [B, 6] f32.  params: kernel-ready tuple from prepare_params().
    Returns (q [B, N_ACTIONS] f32, action [B] int32, max_q [B] f32).
    """
    w1, w2, w3, b1, b2, b3 = params
    B = x.shape[0]
    n_actions = w3.shape[0]

    # Batch tile on the lane axis: must be a multiple of 128.
    tb = _round_up(min(block_b, _round_up(B, 128)), 128)
    # If everything fits in one (large) block, split it in two so both v7x
    # TensorCores get work; harmless extra grid step on single-TC v5e/v6e.
    if _round_up(B, tb) // tb == 1 and tb >= 256:
        tb = _round_up(tb // 2, 128)
    b_pad = _round_up(B, tb)
    n_blocks = b_pad // tb

    # Single fused XLA pass over x (transpose + bf16 cast + pad) under jit.
    xT = jnp.transpose(x).astype(jnp.bfloat16)            # [6, B]
    if b_pad != B:
        xT = jnp.pad(xT, ((0, 0), (0, b_pad - B)))

    batch_spec = lambda shape: pl.BlockSpec(shape, lambda i: (0, i))
    resident_spec = lambda shape: pl.BlockSpec(shape, lambda i: (0, 0))

    qT, act, max_q = pl.pallas_call(
        dqn_mlp_kernel,
        out_shape=(
            jax.ShapeDtypeStruct((n_actions, b_pad), jnp.float32),
            jax.ShapeDtypeStruct((1, b_pad), jnp.int32),
            jax.ShapeDtypeStruct((1, b_pad), jnp.float32),
        ),
        grid=(n_blocks,),
        in_specs=[
            batch_spec((6, tb)),
            resident_spec(w1.shape),
            resident_spec(w2.shape),
            resident_spec(w3.shape),
            resident_spec(b1.shape),
            resident_spec(b2.shape),
            resident_spec(b3.shape),
        ],
        out_specs=(
            batch_spec((n_actions, tb)),
            batch_spec((1, tb)),
            batch_spec((1, tb)),
        ),
        compiler_params=pltpu.CompilerParams(
            dimension_semantics=("parallel",),
        ),
    )(xT, w1, w2, w3, b1, b2, b3)

    return qT[:, :B].T, act[0, :B], max_q[0, :B]


def init_params(key, n_actions):
    """PyTorch-style nn.Linear params (f32): W [out, in], b [out]."""
    dims = [(6, 128), (128, 64), (64, n_actions)]
    params = []
    for fan_in, fan_out in dims:
        kw, kb, key = jax.random.split(key, 3)
        bound = 1.0 / jnp.sqrt(fan_in)  # PyTorch default Linear init range
        w = jax.random.uniform(kw, (fan_out, fan_in), jnp.float32, -bound, bound)
        b = jax.random.uniform(kb, (fan_out,), jnp.float32, -bound, bound)
        params += [w, b]
    return tuple(params)


def prepare_params(torch_style_params):
    """One-time conversion to kernel layout (hoisted out of the per-call path):
    bf16 weights in [out, in] layout, f32 biases as [out, 1] columns."""
    w1, b1, w2, b2, w3, b3 = torch_style_params
    return (
        w1.astype(jnp.bfloat16),
        w2.astype(jnp.bfloat16),
        w3.astype(jnp.bfloat16),
        b1.reshape(-1, 1).astype(jnp.float32),
        b2.reshape(-1, 1).astype(jnp.float32),
        b3.reshape(-1, 1).astype(jnp.float32),
    )


if __name__ == "__main__":
    key = jax.random.PRNGKey(0)
    k_x, k_p = jax.random.split(key)

    N_ACTIONS = 4
    B = 300                       # deliberately not a multiple of the block size
    x = jax.random.normal(k_x, (B, 6), dtype=jnp.float32)
    torch_params = init_params(k_p, N_ACTIONS)
    params = prepare_params(torch_params)     # one-time weight prep

    q, act, max_q = dqn_forward(x, params, block_b=128)   # grid = (3,), padded to 384
    q, act, max_q = jax.block_until_ready((q, act, max_q))

    # Reference in plain JAX, mirroring the kernel's bf16-operand / f32-accumulate path.
    w1, b1, w2, b2, w3, b3 = torch_params
    bf = lambda a: a.astype(jnp.bfloat16).astype(jnp.float32)
    hp = jax.lax.Precision.HIGHEST
    h1 = jnp.maximum(jnp.dot(bf(x), bf(w1).T, precision=hp) + b1, 0.0)
    h2 = jnp.maximum(jnp.dot(bf(h1), bf(w2).T, precision=hp) + b2, 0.0)
    ref = jnp.dot(bf(h2), bf(w3).T, precision=hp) + b3

    assert q.shape == (B, N_ACTIONS)
    assert act.shape == (B,) and max_q.shape == (B,)
    assert jnp.allclose(q, ref, atol=1e-3, rtol=1e-3), float(jnp.max(jnp.abs(q - ref)))
    assert bool(jnp.all(act == jnp.argmax(q, axis=-1)))
    assert bool(jnp.all(max_q == jnp.max(q, axis=-1)))

    print("KERNEL_OK")
</pallas_src>

<mosaic_0001>
module attributes {stable_mosaic.version = 11 : i64} {
  func.func @dqn_mlp_kernel(%arg0: i32, %arg1: memref<6x128xbf16, #tpu.memory_space<vmem>>, %arg2: memref<128x6xbf16, #tpu.memory_space<vmem>>, %arg3: memref<64x128xbf16, #tpu.memory_space<vmem>>, %arg4: memref<4x64xbf16, #tpu.memory_space<vmem>>, %arg5: memref<128x1xf32, #tpu.memory_space<vmem>>, %arg6: memref<64x1xf32, #tpu.memory_space<vmem>>, %arg7: memref<4x1xf32, #tpu.memory_space<vmem>>, %arg8: memref<4x128xf32, #tpu.memory_space<vmem>>, %arg9: memref<1x128xi32, #tpu.memory_space<vmem>>, %arg10: memref<1x128xf32, #tpu.memory_space<vmem>>) attributes {dimension_semantics = [#tpu.dimension_semantics<parallel>], iteration_bounds = array<i64: 3>, scalar_prefetch = 0 : i64, scratch_operands = 0 : i64, tpu.core_type = #tpu.core_type<tc>, window_params = [{transform_indices = @transform_0, window_bounds = array<i64: 6, 128>}, {pipeline_mode = #tpu.pipeline_mode<synchronous>, transform_indices = @transform_1, window_bounds = array<i64: 128, 6>}, {pipeline_mode = #tpu.pipeline_mode<synchronous>, transform_indices = @transform_2, window_bounds = array<i64: 64, 128>}, {pipeline_mode = #tpu.pipeline_mode<synchronous>, transform_indices = @transform_3, window_bounds = array<i64: 4, 64>}, {pipeline_mode = #tpu.pipeline_mode<synchronous>, transform_indices = @transform_4, window_bounds = array<i64: 128, 1>}, {pipeline_mode = #tpu.pipeline_mode<synchronous>, transform_indices = @transform_5, window_bounds = array<i64: 64, 1>}, {pipeline_mode = #tpu.pipeline_mode<synchronous>, transform_indices = @transform_6, window_bounds = array<i64: 4, 1>}, {transform_indices = @transform_7, window_bounds = array<i64: 4, 128>}, {transform_indices = @transform_8, window_bounds = array<i64: 1, 128>}, {transform_indices = @transform_9, window_bounds = array<i64: 1, 128>}]} {
    %c0 = arith.constant 0 : index
    %c0_0 = arith.constant 0 : index
    %0 = vector.load %arg1[%c0, %c0_0] : memref<6x128xbf16, #tpu.memory_space<vmem>>, vector<6x128xbf16>
    %c0_1 = arith.constant 0 : index
    %c0_2 = arith.constant 0 : index
    %1 = vector.load %arg2[%c0_1, %c0_2] : memref<128x6xbf16, #tpu.memory_space<vmem>>, vector<128x6xbf16>
    %cst = arith.constant dense<0.000000e+00> : vector<128x128xf32>
    %2 = tpu.matmul %1, %0, %cst {dimension_numbers = #tpu.dot_dimension_numbers<[1], [0], [0], [1], [0, 0, 1, 1], [], []>} : vector<128x6xbf16>, vector<6x128xbf16>, vector<128x128xf32> -> vector<128x128xf32>
    %c0_3 = arith.constant 0 : index
    %c0_4 = arith.constant 0 : index
    %3 = vector.load %arg5[%c0_3, %c0_4] : memref<128x1xf32, #tpu.memory_space<vmem>>, vector<128x1xf32>
    %4 = vector.broadcast %3 : vector<128x1xf32> to vector<128x128xf32>
    %5 = arith.addf %2, %4 : vector<128x128xf32>
    %cst_5 = arith.constant 0.000000e+00 : f32
    %6 = vector.broadcast %cst_5 : f32 to vector<128x128xf32>
    %7 = arith.maximumf %5, %6 : vector<128x128xf32>
    %c0_6 = arith.constant 0 : index
    %c0_7 = arith.constant 0 : index
    %8 = vector.load %arg3[%c0_6, %c0_7] : memref<64x128xbf16, #tpu.memory_space<vmem>>, vector<64x128xbf16>
    %9 = arith.truncf %7 : vector<128x128xf32> to vector<128x128xbf16>
    %cst_8 = arith.constant dense<0.000000e+00> : vector<64x128xf32>
    %10 = tpu.matmul %8, %9, %cst_8 {dimension_numbers = #tpu.dot_dimension_numbers<[1], [0], [0], [1], [0, 0, 1, 1], [], []>} : vector<64x128xbf16>, vector<128x128xbf16>, vector<64x128xf32> -> vector<64x128xf32>
    %c0_9 = arith.constant 0 : index
    %c0_10 = arith.constant 0 : index
    %11 = vector.load %arg6[%c0_9, %c0_10] : memref<64x1xf32, #tpu.memory_space<vmem>>, vector<64x1xf32>
    %12 = vector.broadcast %11 : vector<64x1xf32> to vector<64x128xf32>
    %13 = arith.addf %10, %12 : vector<64x128xf32>
    %cst_11 = arith.constant 0.000000e+00 : f32
    %14 = vector.broadcast %cst_11 : f32 to vector<64x128xf32>
    %15 = arith.maximumf %13, %14 : vector<64x128xf32>
    %c0_12 = arith.constant 0 : index
    %c0_13 = arith.constant 0 : index
    %16 = vector.load %arg4[%c0_12, %c0_13] : memref<4x64xbf16, #tpu.memory_space<vmem>>, vector<4x64xbf16>
    %17 = arith.truncf %15 : vector<64x128xf32> to vector<64x128xbf16>
    %cst_14 = arith.constant dense<0.000000e+00> : vector<4x128xf32>
    %18 = tpu.matmul %16, %17, %cst_14 {dimension_numbers = #tpu.dot_dimension_numbers<[1], [0], [0], [1], [0, 0, 1, 1], [], []>} : vector<4x64xbf16>, vector<64x128xbf16>, vector<4x128xf32> -> vector<4x128xf32>
    %c0_15 = arith.constant 0 : index
    %c0_16 = arith.constant 0 : index
    %19 = vector.load %arg7[%c0_15, %c0_16] : memref<4x1xf32, #tpu.memory_space<vmem>>, vector<4x1xf32>
    %20 = vector.broadcast %19 : vector<4x1xf32> to vector<4x128xf32>
    %21 = arith.addf %18, %20 : vector<4x128xf32>
    %c0_17 = arith.constant 0 : index
    %c0_18 = arith.constant 0 : index
    %22 = vector.load %arg8[%c0_17, %c0_18] : memref<4x128xf32, #tpu.memory_space<vmem>>, vector<4x128xf32>
    tpu.vector_store %arg8[%c0_17, %c0_18], %21 {strides = array<i32>} : memref<4x128xf32, #tpu.memory_space<vmem>>, vector<4x128xf32>,
    %cst_19 = arith.constant dense<0xFF800000> : vector<128xf32>
    %23 = vector.multi_reduction <maximumf>, %21, %cst_19 [0] : vector<4x128xf32> to vector<128xf32>
    %24 = vector.shape_cast %23 : vector<128xf32> to vector<1x128xf32>
    %25 = tpu.iota {dimensions = array<i32: 0>} : vector<4x128xi32>
    %26 = vector.broadcast %24 : vector<1x128xf32> to vector<4x128xf32>
    %27 = arith.cmpf oeq, %21, %26 : vector<4x128xf32>
    %c4_i32 = arith.constant 4 : i32
    %28 = vector.broadcast %c4_i32 : i32 to vector<4x128xi32>
    %29 = arith.select %27, %25, %28 : vector<4x128xi1>, vector<4x128xi32>
    %cst_20 = arith.constant dense<2147483647> : vector<128xi32>
    %30 = vector.multi_reduction <minsi>, %29, %cst_20 [0] : vector<4x128xi32> to vector<128xi32>
    %31 = vector.shape_cast %30 : vector<128xi32> to vector<1x128xi32>
    %c0_21 = arith.constant 0 : index
    %c0_22 = arith.constant 0 : index
    %32 = vector.load %arg9[%c0_21, %c0_22] : memref<1x128xi32, #tpu.memory_space<vmem>>, vector<1x128xi32>
    tpu.vector_store %arg9[%c0_21, %c0_22], %31 {strides = array<i32>} : memref<1x128xi32, #tpu.memory_space<vmem>>, vector<1x128xi32>,
    %c0_23 = arith.constant 0 : index
    %c0_24 = arith.constant 0 : index
    %33 = vector.load %arg10[%c0_23, %c0_24] : memref<1x128xf32, #tpu.memory_space<vmem>>, vector<1x128xf32>
    tpu.vector_store %arg10[%c0_23, %c0_24], %24 {strides = array<i32>} : memref<1x128xf32, #tpu.memory_space<vmem>>, vector<1x128xf32>,
    return
  }
  func.func @transform_0(%arg0: i32) -> (i32, i32) {
    %c0_i32 = arith.constant 0 : i32
    %c0_i32_0 = arith.constant 0 : i32
    return %c0_i32, %arg0 : i32, i32
  }
  func.func @transform_1(%arg0: i32) -> (i32, i32) {
    %c0_i32 = arith.constant 0 : i32
    %c0_i32_0 = arith.constant 0 : i32
    %c0_i32_1 = arith.constant 0 : i32
    return %c0_i32, %c0_i32_0 : i32, i32
  }
  func.func @transform_2(%arg0: i32) -> (i32, i32) {
    %c0_i32 = arith.constant 0 : i32
    %c0_i32_0 = arith.constant 0 : i32
    %c0_i32_1 = arith.constant 0 : i32
    return %c0_i32, %c0_i32_0 : i32, i32
  }
  func.func @transform_3(%arg0: i32) -> (i32, i32) {
    %c0_i32 = arith.constant 0 : i32
    %c0_i32_0 = arith.constant 0 : i32
    %c0_i32_1 = arith.constant 0 : i32
    return %c0_i32, %c0_i32_0 : i32, i32
  }
  func.func @transform_4(%arg0: i32) -> (i32, i32) {
    %c0_i32 = arith.constant 0 : i32
    %c0_i32_0 = arith.constant 0 : i32
    %c0_i32_1 = arith.constant 0 : i32
    return %c0_i32, %c0_i32_0 : i32, i32
  }
  func.func @transform_5(%arg0: i32) -> (i32, i32) {
    %c0_i32 = arith.constant 0 : i32
    %c0_i32_0 = arith.constant 0 : i32
    %c0_i32_1 = arith.constant 0 : i32
    return %c0_i32, %c0_i32_0 : i32, i32
  }
  func.func @transform_6(%arg0: i32) -> (i32, i32) {
    %c0_i32 = arith.constant 0 : i32
    %c0_i32_0 = arith.constant 0 : i32
    %c0_i32_1 = arith.constant 0 : i32
    return %c0_i32, %c0_i32_0 : i32, i32
  }
  func.func @transform_7(%arg0: i32) -> (i32, i32) {
    %c0_i32 = arith.constant 0 : i32
    %c0_i32_0 = arith.constant 0 : i32
    return %c0_i32, %arg0 : i32, i32
  }
  func.func @transform_8(%arg0: i32) -> (i32, i32) {
    %c0_i32 = arith.constant 0 : i32
    %c0_i32_0 = arith.constant 0 : i32
    return %c0_i32, %arg0 : i32, i32
  }
  func.func @transform_9(%arg0: i32) -> (i32, i32) {
    %c0_i32 = arith.constant 0 : i32
    %c0_i32_0 = arith.constant 0 : i32
    return %c0_i32, %arg0 : i32, i32
  }
}

</mosaic_0001>

<bundles_post_ra>
// kernel: dqn_forward.1
= control target key start
LH: loop header
LB: loop body
LE: loop exit
PB: predicated region body
PF: predicated region fallthrough
CT: control target
= control target key end

     0   :  { %s1182_s30 = smov 0   ;;  %s1347_s0 = inlined_call_operand.vmem [shape: bf16[6,384], index: 0, kind: input, shape index: {}]   ;;  %s1348_s1 = inlined_call_operand.vmem [shape: bf16[128,6], index: 1, kind: input, shape index: {}]   ;;  %s1349_s2 = inlined_call_operand.vmem [shape: bf16[64,128], index: 2, kind: input, shape index: {}]   ;;  %s1350_s3 = inlined_call_operand.vmem [shape: bf16[4,64], index: 3, kind: input, shape index: {}]   ;;  %s1351_s4 = inlined_call_operand.vmem [shape: f32[128,1], index: 4, kind: input, shape index: {}]   ;;  %s1352_s5 = inlined_call_operand.vmem [shape: f32[64,1], index: 5, kind: input, shape index: {}]   ;;  %s1353_s6 = inlined_call_operand.vmem [shape: f32[4,1], index: 6, kind: input, shape index: {}]   ;;  %s1354_s7 = inlined_call_operand.vmem [shape: f32[4,384], index: 7, kind: output, shape index: {0}]   ;;  %s1355_s8 = inlined_call_operand.vmem [shape: s32[1,384], index: 8, kind: output, shape index: {1}]   ;;  %s1356_s9 = inlined_call_operand.vmem [shape: f32[1,384], index: 9, kind: output, shape index: {2}]  }
   0x1 LB: > { %s985_s10 = sadd.s32 4294967295, %s1127_s30   ;;  %p989_p0 = scmp.ge.s32.totalorder %s1127_s30, 1  ;;  %s1127_s30 = sphi %s1182_s30, %s20_s30  }
   0x2   : > { %p291_p1 = scmp.lt.s32.totalorder %s1127_s30, 4 }
   0x4   : > { %p292_p2 = pnand %p989_p0, %p291_p1 }
   0x5   : > { %p331_p3 = scmp.lt.s32.totalorder (!%p292_p2), %s985_s10, 2 }
   0x6   : > { %295 = sbr.rel (%p292_p2) target bundleno = 728 (0x2d8), region = 48 }
   0xb   : > { %v1109_v0 = vld [vmem:[%s1348_s1] sm:$0xff]   ;;  %vm499_vm0 = vcmask 48128   ;;  %s1358_s10 = smov (!%p331_p3, %s985_s10), 2  ;;  %vm524_vm1 = vcmask 1042432   ;;  %v1129_v1 = vmov 0   ;;  %v1110_v4 = vld [vmem:[%s1348_s1 + $0x8] sm:$0xff]  }
   0xc   : > { %1043 = vmatprep.mubr.msk.bf16.mxu0 %vm499_vm0, %v1109_v0  ;;  %s990_s13 = sshll.u32 %s1358_s10, 2  ;;  %1107 = vset.pattern.permute.xlu0 %v1129_v1  ;;  %v1111_v5 = vld [vmem:[%s1348_s1 + $0x10] sm:$0xff]   ;;  %v375_v7 = vld [vmem:[%s1351_s4 + $0x60] sm:$0xff]  ;;  %v378_v8 = vld [vmem:[%s1351_s4 + $0x78] sm:$0xff]  ;;  %vm1131_vm2 = vmmov 0   ;;  %vm813_vm3 = vcmask 523264   ;;  %s344_s23 = scalar_lea.vmem %s1356_s9, %s1358_s10 }
   0xd   : > { %1108 = vset.pattern.permute.xlu1 %v1129_v1  ;;  %s334_s16 = scalar_lea.vmem %s1347_s0, %s990_s13  ;;  %v377_v6 = vld [vmem:[%s1351_s4 + $0x70] sm:$0xff]  ;;  %v376_v9 = vld [vmem:[%s1351_s4 + $0x68] sm:$0xff]  ;;  %v1112_v11 = vld [vmem:[%s1348_s1 + $0x18] sm:$0xff]   ;;  %s338_s21 = scalar_lea.vmem %s1354_s7, %s990_s13  ;;  %vm858_vm4 = vcmask 1043456  }
   0xe   : > { %v346_v2 = vld [vmem:[%s334_s16] sm:$0x7]  ;;  %451 = vperm.xlu0 %1107, %v377_v6   ;;  %441 = vperm.xlu1 %1108, %v375_v7   ;;  %v373_v10 = vld [vmem:[%s1351_s4 + $0x50] sm:$0xff]  ;;  %v374_v12 = vld [vmem:[%s1351_s4 + $0x58] sm:$0xff]  ;;  %s341_s26 = scalar_lea.vmem %s1355_s8, %s1358_s10 }
   0xf   : > { %1095 = vmatprep.subr.msk.bf16.mxu0 %vm524_vm1, %v346_v2  ;;  %v526_v3 = vsel %vm524_vm1, %v346_v2, 0  ;;  %v1113_v13 = vld [vmem:[%s1348_s1 + $0x20] sm:$0xff]   ;;  %v372_v15 = vld [vmem:[%s1351_s4 + $0x48] sm:$0xff]  ;;  %v369_v16 = vld [vmem:[%s1351_s4 + $0x30] sm:$0xff] }
  0x10   : > { %1042 = vmatpush3.bf16.msra.mxu0 %v526_v3  ;;  %v371_v14 = vld [vmem:[%s1351_s4 + $0x40] sm:$0xff]  ;;  %v1114_v17 = vld [vmem:[%s1348_s1 + $0x28] sm:$0xff]   ;;  %v370_v18 = vld [vmem:[%s1351_s4 + $0x38] sm:$0xff] }
  0x11   : > { %v1115_v19 = vld [vmem:[%s1348_s1 + $0x30] sm:$0xff]   ;;  %v367_v20 = vld [vmem:[%s1351_s4 + $0x20] sm:$0xff]  ;;  %v368_v21 = vld [vmem:[%s1351_s4 + $0x28] sm:$0xff] }
  0x12   : > { %456 = vperm.xlu0 %1107, %v378_v8   ;;  %446 = vperm.xlu1 %1108, %v376_v9   ;;  %v365_v22 = vld [vmem:[%s1351_s4 + $0x10] sm:$0xff]  ;;  %v1116_v23 = vld [vmem:[%s1348_s1 + $0x38] sm:$0xff]   ;;  %v363_v25 = vld [vmem:[%s1351_s4] sm:$0xff] }
  0x13   : > { %1044 = vmatmul.mubr.msk.bf16.vlgmr.msra.gmra.mxu0 %vm499_vm0, %v1110_v4  ;;  %v366_v24 = vld [vmem:[%s1351_s4 + $0x18] sm:$0xff]  ;;  %v364_v26 = vld [vmem:[%s1351_s4 + $0x8] sm:$0xff]  ;;  %v663_v27 = vld [vmem:[%s1352_s5 + $0x30] sm:$0xff] }
  0x14   : > { %1047 = vmatprep.mubr.msk.bf16.mxu0 %vm499_vm0, %v1111_v5  ;;  %v664_v28 = vld [vmem:[%s1352_s5 + $0x38] sm:$0xff]  ;;  %v661_v29 = vld [vmem:[%s1352_s5 + $0x20] sm:$0xff]  ;;  %v662_v30 = vld [vmem:[%s1352_s5 + $0x28] sm:$0xff] }
  0x15   : > { %v659_v31 = vld [vmem:[%s1352_s5 + $0x10] sm:$0xff]  ;;  %v660_v32 = vld [vmem:[%s1352_s5 + $0x18] sm:$0xff]  ;;  %v657_v33 = vld [vmem:[%s1352_s5] sm:$0xff] }
  0x16   : > { %431 = vperm.xlu0 %1107, %v373_v10   ;;  %436 = vperm.xlu1 %1108, %v374_v12   ;;  %v658_v34 = vld [vmem:[%s1352_s5 + $0x8] sm:$0xff]  ;;  %v807_v35 = vld [vmem:[%s1353_s6] sm:$0xf] }
  0x17   : > { %v1117_v36 = vld [vmem:[%s1349_s2] sm:$0xff]  }
  0x18   : > { %1075 = vmatprep.mubr.bf16.mxu1 %v1117_v36 }
  0x1a   : > { %421 = vperm.xlu0 %1107, %v371_v14   ;;  %426 = vperm.xlu1 %1108, %v372_v15  }
  0x1b   : > { %1048 = vmatmul.mubr.msk.bf16.gmra.mxu0 %vm499_vm0, %v1112_v11 }
  0x1c   : > { %1051 = vmatprep.mubr.msk.bf16.mxu0 %vm499_vm0, %v1113_v13 }
  0x1e   : > { %411 = vperm.xlu0 %1107, %v369_v16   ;;  %416 = vperm.xlu1 %1108, %v370_v18  }
  0x22   : > { %401 = vperm.xlu0 %1107, %v367_v20   ;;  %406 = vperm.xlu1 %1108, %v368_v21  }
  0x23   : > { %1052 = vmatmul.mubr.msk.bf16.gmra.mxu0 %vm499_vm0, %v1114_v17 }
  0x24   : > { %1055 = vmatprep.mubr.msk.bf16.mxu0 %vm499_vm0, %v1115_v19 }
  0x26   : > { %391 = vperm.xlu0 %1107, %v365_v22   ;;  %396 = vperm.xlu1 %1108, %v366_v24  }
  0x2a   : > { %381 = vperm.xlu0 %1107, %v363_v25   ;;  %386 = vperm.xlu1 %1108, %v364_v26  }
  0x2b   : > { %1056 = vmatmul.mubr.msk.bf16.gmra.mxu0 %vm499_vm0, %v1116_v23 }
  0x2e   : > { %697 = vperm.xlu0 %1107, %v663_v27   ;;  %702 = vperm.xlu1 %1108, %v664_v28  }
  0x32   : > { %687 = vperm.xlu0 %1107, %v661_v29   ;;  %692 = vperm.xlu1 %1108, %v662_v30  }
  0x36   : > { %677 = vperm.xlu0 %1107, %v659_v31   ;;  %682 = vperm.xlu1 %1108, %v660_v32  }
  0x3a   : > { %667 = vperm.xlu0 %1107, %v657_v33   ;;  %672 = vperm.xlu1 %1108, %v658_v34  }
  0x3e   : > { %810 = vperm.xlu0 %1107, %v807_v35  }
  0x89   : > { %v442_v40 = vpop.permute.xlu1 %441  ;;  %v452_v42 = vpop.permute.xlu0 %451 }
  0x8d   : > { %v447_v45 = vpop.permute.xlu1 %446  ;;  %v457_v47 = vpop.permute.xlu0 %456 }
  0x91   : > { %v437_v50 = vpop.permute.xlu1 %436  ;;  %v432_v52 = vpop.permute.xlu0 %431 }
  0x95   : > { %v427_v55 = vpop.permute.xlu1 %426  ;;  %v422_v57 = vpop.permute.xlu0 %421 }
  0x99   : > { %v417_v63 = vpop.permute.xlu1 %416  ;;  %v412_v5 = vpop.permute.xlu0 %411 }
  0x9d   : > { %v407_v13 = vpop.permute.xlu1 %406  ;;  %v402_v16 = vpop.permute.xlu0 %401 }
  0xa1   : > { %v397_v22 = vpop.permute.xlu1 %396  ;;  %v392_v26 = vpop.permute.xlu0 %391 }
  0xa5   : > { %v387_v32 = vpop.permute.xlu1 %386  ;;  %v382_v35 = vpop.permute.xlu0 %381 }
  0xd3   : > { %v1308_v37 = vpop.f32.mrf.mxu0 }
  0xd4   : > { %v571_v33 = vadd.f32 %v1308_v37, %v392_v26  ;;  %v1118_v37 = vld [vmem:[%s1349_s2 + $0x8] sm:$0xff]  }
  0xd5   : > { %v1310_v38 = vpop.f32.mrf.mxu0 }
  0xd7   : > { %v1046_v39 = vpop.f32.mrf.mxu0 }
  0xd8   : > { %v574_v29 = vadd.f32 %v1046_v39, %v397_v22 }
  0xd9   : > { %v1312_v41 = vpop.f32.mrf.mxu0 }
  0xda   : > { %v628_v36 = vmax.f32 %v574_v29, 0.0 }
  0xdb   : > { %v1049_v43 = vpop.f32.mrf.mxu0 }
  0xdc   : > { %v587_v20 = vadd.f32 %v1049_v43, %v412_v5  ;;  %v627_v43 = vmax.f32 %v571_v33, 0.0 }
  0xdd   : > { %v578_v44 = vpop.f32.mrf.mxu0 }
  0xde   : > { %v631_v27 = vmax.f32 %v587_v20, 0.0  ;;  %v579_v28 = vadd.f32 %v578_v44, %v402_v16  ;;  %v650_v44 = vpack.c.bf16 %v628_v36, %v627_v43 }
  0xdf   : > { %v1050_v46 = vpop.f32.mrf.mxu0 }
  0xe0   : > { %v590_v17 = vadd.f32 %v1050_v46, %v417_v63  ;;  %v629_v34 = vmax.f32 %v579_v28, 0.0 }
  0xe1   : > { %v581_v48 = vpop.f32.mrf.mxu0 }
  0xe2   : > { %v632_v23 = vmax.f32 %v590_v17, 0.0  ;;  %v582_v24 = vadd.f32 %v581_v48, %v407_v13  ;;  %v1130_v48 = vmov 0.0  }
  0xe3   : > { %v1053_v49 = vpop.f32.mrf.mxu0  ;;  %1083 = vmatprep.subr.bf16.mxu0 %v1130_v48  ;;  %1091 = vmatprep.mubr.msk.bf16.mxu0 %vm1131_vm2, %v1130_v48 }
  0xe4   : > { %v603_v6 = vadd.f32 %v1053_v49, %v432_v52  ;;  %v652_v30 = vpack.c.bf16 %v632_v23, %v631_v27  ;;  %v630_v31 = vmax.f32 %v582_v24, 0.0  ;;  %v698_v52 = vpop.permute.xlu0 %697 }
  0xe5   : > { %v594_v51 = vpop.f32.mrf.mxu0 }
  0xe6   : > { %v635_v14 = vmax.f32 %v603_v6, 0.0  ;;  %v595_v15 = vadd.f32 %v594_v51, %v422_v57 }
  0xe7   : > { %v1054_v53 = vpop.f32.mrf.mxu0 }
  0xe8   : > { %v606_v1 = vadd.f32 %v1054_v53, %v437_v50  ;;  %v633_v21 = vmax.f32 %v595_v15, 0.0  ;;  %v703_v50 = vpop.permute.xlu1 %702  ;;  %v688_v57 = vpop.permute.xlu0 %687 }
  0xe9   : > { %v597_v54 = vpop.f32.mrf.mxu0 }
  0xea   : > { %v636_v10 = vmax.f32 %v606_v1, 0.0  ;;  %v598_v11 = vadd.f32 %v597_v54, %v427_v55 }
  0xeb   : > { %v1057_v56 = vpop.f32.mrf.mxu0 }
  0xec   : > { %v619_v59 = vadd.f32 %v1057_v56, %v452_v42  ;;  %v654_v18 = vpack.c.bf16 %v636_v10, %v635_v14  ;;  %v634_v19 = vmax.f32 %v598_v11, 0.0  ;;  %v651_v42 = vpack.c.bf16 %v630_v31, %v629_v34  ;;  %v693_v55 = vpop.permute.xlu1 %692 }
  0xed   : > { %v610_v58 = vpop.f32.mrf.mxu0 }
  0xee   : > { %v611_v61 = vadd.f32 %v610_v58, %v442_v40  ;;  %v639_v2 = vmax.f32 %v619_v59, 0.0  ;;  %v653_v25 = vpack.c.bf16 %v634_v19, %v633_v21  ;;  %v566_v40 = vadd.f32 %v1312_v41, %v387_v32  ;;  %v1119_v41 = vld [vmem:[%s1349_s2 + $0x10] sm:$0xff]   ;;  %v802_v21 = vld [vmem:[%s1350_s3] sm:$0x3] }
  0xef   : > { %v1058_v60 = vpop.f32.mrf.mxu0  ;;  %v866_v32 = vlaneseq }
  0xf0   : > { %v622_v62 = vadd.f32 %v1058_v60, %v457_v47  ;;  %v637_v7 = vmax.f32 %v611_v61, 0.0  ;;  %v626_v39 = vmax.f32 %v566_v40, 0.0 }
  0xf1   : > { %v613_v0 = vpop.f32.mrf.mxu0 }
  0xf2   : > { %v640_v3 = vmax.f32 %v622_v62, 0.0  ;;  %v614_v4 = vadd.f32 %v613_v0, %v447_v45  ;;  %v563_v45 = vadd.f32 %v1310_v38, %v382_v35  ;;  %v1120_v38 = vld [vmem:[%s1349_s2 + $0x18] sm:$0xff]   ;;  %v683_v62 = vpop.permute.xlu1 %682  ;;  %v867_v35 = vshrl.u32 %v866_v32, 7 }
  0xf4   : > { %v638_v8 = vmax.f32 %v614_v4, 0.0  ;;  %v656_v9 = vpack.c.bf16 %v640_v3, %v639_v2  ;;  %v625_v46 = vmax.f32 %v563_v45, 0.0  ;;  %v678_v4 = vpop.permute.xlu0 %677 }
  0xf6   : > { %v655_v12 = vpack.c.bf16 %v638_v8, %v637_v7  ;;  %1059 = vmatprep.subr.bf16.mxu1 %v656_v9  ;;  %v649_v47 = vpack.c.bf16 %v626_v39, %v625_v46  ;;  %v673_v10 = vpop.permute.xlu1 %672 }
  0xf7   : > { %1060 = vmatpush3.bf16.msra.mxu1 %v656_v9 }
  0xf8   : > { %1061 = vmatprep.subr.bf16.mxu1 %v655_v12  ;;  %v668_v14 = vpop.permute.xlu0 %667 }
  0xfb   : > { %1062 = vmatpush3.bf16.msra.mxu1 %v655_v12 }
  0xfc   : > { %1063 = vmatprep.subr.bf16.mxu1 %v654_v18  ;;  %v811_v22 = vpop.permute.xlu0 %810 }
  0xff   : > { %1064 = vmatpush3.bf16.msra.mxu1 %v654_v18 }
 0x100   : > { %1065 = vmatprep.subr.bf16.mxu1 %v653_v25 }
 0x103   : > { %1066 = vmatpush3.bf16.msra.mxu1 %v653_v25 }
 0x104   : > { %1067 = vmatprep.subr.bf16.mxu1 %v652_v30 }
 0x107   : > { %1068 = vmatpush3.bf16.msra.mxu1 %v652_v30 }
 0x108   : > { %1069 = vmatprep.subr.bf16.mxu1 %v651_v42 }
 0x10b   : > { %1070 = vmatpush3.bf16.msra.mxu1 %v651_v42 }
 0x10c   : > { %1071 = vmatprep.subr.bf16.mxu1 %v650_v44 }
 0x10f   : > { %1072 = vmatpush3.bf16.msra.mxu1 %v650_v44 }
 0x110   : > { %1073 = vmatprep.subr.bf16.mxu1 %v649_v47 }
 0x113   : > { %1074 = vmatpush3.bf16.msra.mxu1 %v649_v47 }
 0x116   : > { %1076 = vmatmul.mubr.bf16.vlgmr.msra.gmra.mxu1 %v1118_v37 }
 0x117   : > { %1079 = vmatprep.mubr.bf16.mxu1 %v1119_v41 }
 0x11e   : > { %1080 = vmatmul.mubr.bf16.gmra.mxu1 %v1120_v38 }
 0x1d6   : > { %v1077_v49 = vpop.f32.mrf.mxu1 }
 0x1d7   : > { %v772_v8 = vadd.f32 %v1077_v49, %v678_v4 }
 0x1d8   : > { %v763_v51 = vpop.f32.mrf.mxu1 }
 0x1d9   : > { %v796_v15 = vmax.f32 %v772_v8, 0.0  ;;  %v764_v16 = vadd.f32 %v763_v51, %v668_v14 }
 0x1da   : > { %v1078_v53 = vpop.f32.mrf.mxu1 }
 0x1db   : > { %v775_v5 = vadd.f32 %v1078_v53, %v683_v62  ;;  %v794_v19 = vmax.f32 %v764_v16, 0.0 }
 0x1dc   : > { %v766_v54 = vpop.f32.mrf.mxu1 }
 0x1dd   : > { %v797_v11 = vmax.f32 %v775_v5, 0.0  ;;  %v767_v12 = vadd.f32 %v766_v54, %v673_v10 }
 0x1de   : > { %v1081_v56 = vpop.f32.mrf.mxu1 }
 0x1df   : > { %v788_v59 = vadd.f32 %v1081_v56, %v698_v52  ;;  %v804_v17 = vpack.c.bf16 %v797_v11, %v796_v15  ;;  %v795_v18 = vmax.f32 %v767_v12, 0.0 }
 0x1e0   : > { %v779_v58 = vpop.f32.mrf.mxu1 }
 0x1e1   : > { %v800_v0 = vmax.f32 %v788_v59, 0.0  ;;  %v780_v1 = vadd.f32 %v779_v58, %v688_v57  ;;  %v803_v20 = vpack.c.bf16 %v795_v18, %v794_v19 }
 0x1e2   : > { %v1082_v60 = vpop.f32.mrf.mxu1 }
 0x1e3   : > { %v791_v61 = vadd.f32 %v1082_v60, %v703_v50  ;;  %v798_v9 = vmax.f32 %v780_v1, 0.0 }
 0x1e4   : > { %v782_v63 = vpop.f32.mrf.mxu1 }
 0x1e5   : > { %v801_v2 = vmax.f32 %v791_v61, 0.0  ;;  %v783_v3 = vadd.f32 %v782_v63, %v693_v55 }
 0x1e7   : > { %v806_v6 = vpack.c.bf16 %v801_v2, %v800_v0  ;;  %v799_v7 = vmax.f32 %v783_v3, 0.0 }
 0x1e9   : > { %1084 = vmatpush3.bf16.msra.mxu0 %v806_v6  ;;  %v805_v13 = vpack.c.bf16 %v799_v7, %v798_v9 }
 0x1ea   : > { %1085 = vmatprep.subr.bf16.mxu0 %v1130_v48 }
 0x1ed   : > { %1086 = vmatpush3.bf16.msra.mxu0 %v805_v13 }
 0x1ee   : > { %1087 = vmatprep.subr.bf16.mxu0 %v1130_v48 }
 0x1f1   : > { %1088 = vmatpush3.bf16.msra.mxu0 %v804_v17 }
 0x1f2   : > { %1089 = vmatprep.subr.bf16.mxu0 %v1130_v48 }
 0x1f5   : > { %1090 = vmatpush3.bf16.msra.mxu0 %v803_v20 }
 0x1f8   : > { %1092 = vmatmul.mubr.msk.bf16.vlgmr.msra.gmra.mxu0 %vm813_vm3, %v802_v21 }
 0x2b8   : > { %v851_v23 = vpop.f32.mrf.mxu0 }
 0x2b9   : > { %v852_v24 = vadd.f32 %v851_v23, %v811_v22 }
 0x2ba   : > { %v1093_v25 = vpop.f32.mrf.mxu0 }
 0x2bb   : > { %857 = vst [vmem:[%s338_s21] sm:$0xf] %v852_v24  ;;  %v859_v26 = vsel %vm858_vm4, %v852_v24, -inf }
 0x2bc   : > { %v860_v27 = vrot.slane %v859_v26, 4  ;;  %v854_v28 = vpop.f32.mrf.mxu0 }
 0x2be   : > { %v861_v29 = vmax.f32 %v859_v26, %v860_v27  ;;  %v1094_v30 = vpop.f32.mrf.mxu0 }
 0x2c0   : > { %v862_v31 = vrot.slane %v861_v29, 2 }
 0x2c2   : > { %v863_v33 = vmax.f32 %v861_v29, %v862_v31 }
 0x2c4   : > { %v864_v34 = vrot.slane %v863_v33, 1 }
 0x2c6   : > { %v865_v36 = vmax.f32 %v863_v33, %v864_v34 }
 0x2c8   : > { %vm868_vm5 = vcmp.eq.f32.partialorder %v852_v24, %v865_v36  ;;  %881 = vst [vmem:[%s344_s23] sm:$0x1] %v865_v36 }
 0x2c9   : > { %v869_v40 = vsel %vm868_vm5, %v867_v35, 4 }
 0x2ca   : > { %v870_v42 = vsel %vm858_vm4, %v869_v40, 2147483647 }
 0x2cb   : > { %v871_v43 = vrot.slane %v870_v42, 4 }
 0x2cd   : > { %vm872_vm6 = vcmp.lt.s32.totalorder %v870_v42, %v871_v43 }
 0x2ce   : > { %v873_v45 = vsel %vm872_vm6, %v870_v42, %v871_v43 }
 0x2cf   : > { %v874_v44 = vrot.slane %v873_v45, 2 }
 0x2d1   : > { %vm875_vm7 = vcmp.lt.s32.totalorder %v873_v45, %v874_v44 }
 0x2d2   : > { %v876_v39 = vsel %vm875_vm7, %v873_v45, %v874_v44 }
 0x2d3   : > { %v877_v46 = vrot.slane %v876_v39, 1 }
 0x2d5   : > { %vm878_vm8 = vcmp.lt.s32.totalorder %v876_v39, %v877_v46 }
 0x2d6   : > { %v879_v47 = vsel %vm878_vm8, %v876_v39, %v877_v46 }
 0x2d7   : > { %880 = vst [vmem:[%s341_s26] sm:$0x1] %v879_v47 }
 0x2d8 PF: > { %s20_s30 = sadd.s32 1, %s1127_s30  }
 0x2d9   : > { %p17_p4 = scmp.ge.s32.totalorder %s20_s30, 5  }
 0x2db   :  { %19 = sbr.rel (!%p17_p4) target bundleno = 1 (0x1), region = 102 }

</bundles_post_ra>
